<compile_context>
chip_gen: v7x
topology: tpu7x:2x2x1
jax: 0.10.0
libtpu: 0.0.40
codegen_flags: <defaults>
</compile_context>

<pallas_src>
from functools import partial

import jax
import jax.numpy as jnp
from jax.experimental import pallas as pl
from jax.experimental.pallas import tpu as pltpu

INPUT_DIM = 10
HIDDEN_DIM = 5
OUTPUT_DIM = 2

LANES = 128  # TPU vreg lane width; batch tiles are multiples of this.

# Default batch-tile targets (rows). ~1-2 MiB of x per step, double-buffered:
#   f32 : 16(sublane-padded) * 32768 * 4B = 2 MiB/buf   -> fits v5e's 16 MiB scoped VMEM
#   bf16: 16 * 65536 * 2B               = 2 MiB/buf   -> ditto
# v7x users with huge batches can pass tile_b=131072 explicitly.
DEFAULT_TILE_B_F32 = 32768
DEFAULT_TILE_B_BF16 = 65536


def _round_up(n, m):
    return ((n + m - 1) // m) * m


def _choose_tile_b(batch, tile_b):
    """Clamp tile_b to the batch, align to 128 lanes, and prefer an even
    number of >=2 grid steps so v7x's two TensorCores stay balanced."""
    tile_b = _round_up(min(int(tile_b), _round_up(max(batch, 1), LANES)), LANES)
    b_pad = _round_up(batch, tile_b)
    n_steps = b_pad // tile_b
    if n_steps >= 2 and n_steps % 2 == 1:
        # Shrink the tile slightly so the step count becomes even (megacore
        # balance on v7x; harmless on v5e/v6e).
        tile_b = _round_up(pl.cdiv(batch, n_steps + 1), LANES)
        b_pad = _round_up(batch, tile_b)
    return tile_b, b_pad


def simple_nn_kernel(xT_ref, w1_ref, b1_ref, w2_ref, b2_ref, oT_ref):
    # fc1 (transposed): (HIDDEN, INPUT) @ (INPUT, TILE_B) -> (HIDDEN, TILE_B)
    # Batch sits on the lane axis, so every vector op is full-width.
    h = jnp.dot(w1_ref[...], xT_ref[...], preferred_element_type=jnp.float32)
    h = jnp.maximum(h + b1_ref[...], 0.0)       # bias broadcast over lanes; ReLU
    # fc2 (transposed), kept fully in f32: (OUT, HIDDEN) @ (HIDDEN, TILE_B).
    y = jnp.dot(w2_ref[...], h, preferred_element_type=jnp.float32)
    y = y + b2_ref[...]
    oT_ref[...] = y.astype(oT_ref.dtype)


@partial(jax.jit, static_argnames=("tile_b", "compute_dtype"))
def simple_nn_forward(x, w1, b1, w2, b2, *, tile_b=None,
                      compute_dtype=jnp.bfloat16):
    """Forward pass of SimpleNN: relu(x @ W1^T + b1) @ W2^T + b2.

    Args:
      x:  (B, INPUT_DIM) float32 activations.
      w1: (HIDDEN_DIM, INPUT_DIM)  -- PyTorch nn.Linear weight layout.
      b1: (HIDDEN_DIM,)
      w2: (OUTPUT_DIM, HIDDEN_DIM)
      b2: (OUTPUT_DIM,)
      tile_b: batch tile size (rounded to a multiple of 128 lanes).  Defaults
        to ~32K rows (f32) / ~64K rows (bf16).
      compute_dtype: dtype used for the x / W1 DMA (bf16 default halves the
        dominant HBM traffic).  fc2 + bias + ReLU + accumulation stay f32.

    Returns:
      (B, OUTPUT_DIM) float32.
    """
    batch = x.shape[0]

    if tile_b is None:
        tile_b = (DEFAULT_TILE_B_BF16 if jnp.dtype(compute_dtype).itemsize < 4
                  else DEFAULT_TILE_B_F32)
    tile_b, b_pad = _choose_tile_b(batch, tile_b)
    grid = (b_pad // tile_b,)

    # Wrapper-side layout plumbing (fused under this jit): transpose to
    # (features, batch), pad the batch, cast the streamed operands.
    # TODO(synk): if the surrounding network keeps activations in
    # (features, batch) bf16 layout, this transpose/pad/cast disappears.
    xT = x.T.astype(compute_dtype)                        # (INPUT_DIM, B)
    if b_pad != batch:
        xT = jnp.pad(xT, ((0, 0), (0, b_pad - batch)))
    w1c = w1.astype(compute_dtype)
    w2c = w2.astype(jnp.float32)                          # fc2 stays f32
    b1c = b1.reshape(HIDDEN_DIM, 1).astype(jnp.float32)
    b2c = b2.reshape(OUTPUT_DIM, 1).astype(jnp.float32)

    in_bytes = (b_pad * INPUT_DIM * jnp.dtype(compute_dtype).itemsize
                + w1c.size * w1c.dtype.itemsize + w2c.size * 4
                + HIDDEN_DIM * 4 + OUTPUT_DIM * 4)
    out_bytes = b_pad * OUTPUT_DIM * 4
    cost = pl.CostEstimate(
        flops=2 * b_pad * (INPUT_DIM * HIDDEN_DIM + HIDDEN_DIM * OUTPUT_DIM),
        transcendentals=0,
        bytes_accessed=in_bytes + out_bytes)

    yT = pl.pallas_call(
        simple_nn_kernel,
        out_shape=jax.ShapeDtypeStruct((OUTPUT_DIM, b_pad), jnp.float32),
        grid=grid,
        in_specs=[
            # Activations: tiled along the lane-dense batch axis.
            pl.BlockSpec((INPUT_DIM, tile_b), lambda i: (0, i)),
            # Weights / biases: full arrays, constant (0, 0) blocks ->
            # DMA'd once and VMEM-resident across all grid steps.
            pl.BlockSpec((HIDDEN_DIM, INPUT_DIM), lambda i: (0, 0)),
            pl.BlockSpec((HIDDEN_DIM, 1), lambda i: (0, 0)),
            pl.BlockSpec((OUTPUT_DIM, HIDDEN_DIM), lambda i: (0, 0)),
            pl.BlockSpec((OUTPUT_DIM, 1), lambda i: (0, 0)),
        ],
        out_specs=pl.BlockSpec((OUTPUT_DIM, tile_b), lambda i: (0, i)),
        compiler_params=pltpu.CompilerParams(
            # Batch tiles are independent -> v7x shards across both TCs.
            dimension_semantics=("parallel",),
        ),
        cost_estimate=cost,
    )(xT, w1c, b1c, w2c, b2c)

    # Strip padding and return in the PyTorch (batch, features) layout.
    return yT[:, :batch].T


def init_params(key):
    # Deterministic init mimicking nn.Linear's uniform(-1/sqrt(fan_in), ...).
    # Weights kept in PyTorch (out_features, in_features) layout.
    k1, k2, k3, k4 = jax.random.split(key, 4)
    bound1 = 1.0 / jnp.sqrt(INPUT_DIM)
    bound2 = 1.0 / jnp.sqrt(HIDDEN_DIM)
    w1 = jax.random.uniform(k1, (HIDDEN_DIM, INPUT_DIM), jnp.float32, -bound1, bound1)
    b1 = jax.random.uniform(k2, (HIDDEN_DIM,), jnp.float32, -bound1, bound1)
    w2 = jax.random.uniform(k3, (OUTPUT_DIM, HIDDEN_DIM), jnp.float32, -bound2, bound2)
    b2 = jax.random.uniform(k4, (OUTPUT_DIM,), jnp.float32, -bound2, bound2)
    return w1, b1, w2, b2


def _reference(x, w1, b1, w2, b2):
    # Pure-JAX reference matching PyTorch: y = relu(x @ W1^T + b1) @ W2^T + b2
    return jnp.maximum(x @ w1.T + b1, 0.0) @ w2.T + b2


if __name__ == "__main__":
    key = jax.random.PRNGKey(0)
    kx, kp, kx2 = jax.random.split(key, 3)
    w1, b1, w2, b2 = init_params(kp)

    # Small demo batch (per the module spec).  The big default tiles pay off
    # at large B; at B=8 everything collapses to a single 128-lane tile.
    batch = 8
    x = jax.random.normal(kx, (batch, INPUT_DIM), jnp.float32)

    # f32 path: exact (up to fp rounding) match with the reference.
    out = jax.block_until_ready(
        simple_nn_forward(x, w1, b1, w2, b2, compute_dtype=jnp.float32))
    ref = _reference(x, w1, b1, w2, b2)
    assert out.shape == (batch, OUTPUT_DIM)
    assert jnp.allclose(out, ref, atol=1e-5, rtol=1e-5)

    # Default bf16-input path (halves the dominant x DMA traffic); fc2 and
    # accumulation are f32, so only input/W1 quantization error remains.
    out_bf16 = jax.block_until_ready(simple_nn_forward(x, w1, b1, w2, b2))
    assert jnp.allclose(out_bf16, ref, atol=2e-2, rtol=2e-2)

    # Multi-tile path: ragged batch with tile_b=128 -> multiple grid steps,
    # padding, and the even-step-count heuristic all exercised.
    batch2 = 300
    x2 = jax.random.normal(kx2, (batch2, INPUT_DIM), jnp.float32)
    ref2 = _reference(x2, w1, b1, w2, b2)
    out2 = jax.block_until_ready(
        simple_nn_forward(x2, w1, b1, w2, b2, tile_b=128,
                          compute_dtype=jnp.float32))
    assert out2.shape == (batch2, OUTPUT_DIM)
    assert jnp.allclose(out2, ref2, atol=1e-5, rtol=1e-5)

    out2_bf16 = jax.block_until_ready(
        simple_nn_forward(x2, w1, b1, w2, b2, tile_b=128))
    assert jnp.allclose(out2_bf16, ref2, atol=2e-2, rtol=2e-2)

    print("KERNEL_OK")
</pallas_src>

<mosaic_0001>
module attributes {stable_mosaic.version = 11 : i64} {
  func.func @simple_nn_kernel(%arg0: i32, %arg1: memref<10x128xf32, #tpu.memory_space<vmem>>, %arg2: memref<5x10xf32, #tpu.memory_space<vmem>>, %arg3: memref<5x1xf32, #tpu.memory_space<vmem>>, %arg4: memref<2x5xf32, #tpu.memory_space<vmem>>, %arg5: memref<2x1xf32, #tpu.memory_space<vmem>>, %arg6: memref<2x128xf32, #tpu.memory_space<vmem>>) attributes {dimension_semantics = [#tpu.dimension_semantics<parallel>], iteration_bounds = array<i64: 1>, scalar_prefetch = 0 : i64, scratch_operands = 0 : i64, tpu.core_type = #tpu.core_type<tc>, window_params = [{transform_indices = @transform_0, window_bounds = array<i64: 10, 128>}, {pipeline_mode = #tpu.pipeline_mode<synchronous>, transform_indices = @transform_1, window_bounds = array<i64: 5, 10>}, {pipeline_mode = #tpu.pipeline_mode<synchronous>, transform_indices = @transform_2, window_bounds = array<i64: 5, 1>}, {pipeline_mode = #tpu.pipeline_mode<synchronous>, transform_indices = @transform_3, window_bounds = array<i64: 2, 5>}, {pipeline_mode = #tpu.pipeline_mode<synchronous>, transform_indices = @transform_4, window_bounds = array<i64: 2, 1>}, {transform_indices = @transform_5, window_bounds = array<i64: 2, 128>}]} {
    %c0 = arith.constant 0 : index
    %c0_0 = arith.constant 0 : index
    %0 = vector.load %arg2[%c0, %c0_0] : memref<5x10xf32, #tpu.memory_space<vmem>>, vector<5x10xf32>
    %c0_1 = arith.constant 0 : index
    %c0_2 = arith.constant 0 : index
    %1 = vector.load %arg1[%c0_1, %c0_2] : memref<10x128xf32, #tpu.memory_space<vmem>>, vector<10x128xf32>
    %cst = arith.constant dense<0.000000e+00> : vector<5x128xf32>
    %2 = tpu.matmul %0, %1, %cst {dimension_numbers = #tpu.dot_dimension_numbers<[1], [0], [0], [1], [0, 0, 1, 1], [], []>} : vector<5x10xf32>, vector<10x128xf32>, vector<5x128xf32> -> vector<5x128xf32>
    %c0_3 = arith.constant 0 : index
    %c0_4 = arith.constant 0 : index
    %3 = vector.load %arg3[%c0_3, %c0_4] : memref<5x1xf32, #tpu.memory_space<vmem>>, vector<5x1xf32>
    %4 = vector.broadcast %3 : vector<5x1xf32> to vector<5x128xf32>
    %5 = arith.addf %2, %4 : vector<5x128xf32>
    %cst_5 = arith.constant 0.000000e+00 : f32
    %6 = vector.broadcast %cst_5 : f32 to vector<5x128xf32>
    %7 = arith.maximumf %5, %6 : vector<5x128xf32>
    %c0_6 = arith.constant 0 : index
    %c0_7 = arith.constant 0 : index
    %8 = vector.load %arg4[%c0_6, %c0_7] : memref<2x5xf32, #tpu.memory_space<vmem>>, vector<2x5xf32>
    %cst_8 = arith.constant dense<0.000000e+00> : vector<2x128xf32>
    %9 = tpu.matmul %8, %7, %cst_8 {dimension_numbers = #tpu.dot_dimension_numbers<[1], [0], [0], [1], [0, 0, 1, 1], [], []>} : vector<2x5xf32>, vector<5x128xf32>, vector<2x128xf32> -> vector<2x128xf32>
    %c0_9 = arith.constant 0 : index
    %c0_10 = arith.constant 0 : index
    %10 = vector.load %arg5[%c0_9, %c0_10] : memref<2x1xf32, #tpu.memory_space<vmem>>, vector<2x1xf32>
    %11 = vector.broadcast %10 : vector<2x1xf32> to vector<2x128xf32>
    %12 = arith.addf %9, %11 : vector<2x128xf32>
    %c0_11 = arith.constant 0 : index
    %c0_12 = arith.constant 0 : index
    %13 = vector.load %arg6[%c0_11, %c0_12] : memref<2x128xf32, #tpu.memory_space<vmem>>, vector<2x128xf32>
    tpu.vector_store %arg6[%c0_11, %c0_12], %12 {strides = array<i32>} : memref<2x128xf32, #tpu.memory_space<vmem>>, vector<2x128xf32>,
    return
  }
  func.func @transform_0(%arg0: i32) -> (i32, i32) {
    %c0_i32 = arith.constant 0 : i32
    %c0_i32_0 = arith.constant 0 : i32
    return %c0_i32, %arg0 : i32, i32
  }
  func.func @transform_1(%arg0: i32) -> (i32, i32) {
    %c0_i32 = arith.constant 0 : i32
    %c0_i32_0 = arith.constant 0 : i32
    %c0_i32_1 = arith.constant 0 : i32
    return %c0_i32, %c0_i32_0 : i32, i32
  }
  func.func @transform_2(%arg0: i32) -> (i32, i32) {
    %c0_i32 = arith.constant 0 : i32
    %c0_i32_0 = arith.constant 0 : i32
    %c0_i32_1 = arith.constant 0 : i32
    return %c0_i32, %c0_i32_0 : i32, i32
  }
  func.func @transform_3(%arg0: i32) -> (i32, i32) {
    %c0_i32 = arith.constant 0 : i32
    %c0_i32_0 = arith.constant 0 : i32
    %c0_i32_1 = arith.constant 0 : i32
    return %c0_i32, %c0_i32_0 : i32, i32
  }
  func.func @transform_4(%arg0: i32) -> (i32, i32) {
    %c0_i32 = arith.constant 0 : i32
    %c0_i32_0 = arith.constant 0 : i32
    %c0_i32_1 = arith.constant 0 : i32
    return %c0_i32, %c0_i32_0 : i32, i32
  }
  func.func @transform_5(%arg0: i32) -> (i32, i32) {
    %c0_i32 = arith.constant 0 : i32
    %c0_i32_0 = arith.constant 0 : i32
    return %c0_i32, %arg0 : i32, i32
  }
}

</mosaic_0001>

<bundles_post_ra>
// kernel: simple_nn_forward.1
= control target key start
LH: loop header
LB: loop body
LE: loop exit
PB: predicated region body
PF: predicated region fallthrough
CT: control target
= control target key end

     0   :  { %vm33_vm0 = vcmask 1041408   ;;  %v229_v0 = vmov 0.0|0.0   ;;  %vm230_vm1 = vmmov 1   ;;  %vm231_vm3 = vmmov 0   ;;  %s285_s0 = inlined_call_operand.vmem [shape: f32[10,128], index: 0, kind: input, shape index: {}]   ;;  %s286_s2 = inlined_call_operand.vmem [shape: f32[5,1], index: 2, kind: input, shape index: {}]   ;;  %s287_s1 = inlined_call_operand.vmem [shape: f32[5,10], index: 1, kind: input, shape index: {}]   ;;  %s288_s4 = inlined_call_operand.vmem [shape: f32[2,1], index: 4, kind: input, shape index: {}]   ;;  %s289_s3 = inlined_call_operand.vmem [shape: f32[2,5], index: 3, kind: input, shape index: {}]   ;;  %s290_s5 = inlined_call_operand.vmem [shape: f32[2,128], index: 5, kind: output, shape index: {}]  }
   0x1   :  { %219 = vmatprep.subr.bf16.mxu0 %v229_v0  ;;  %v21_v1 = vld [vmem:[%s285_s0] sm:$0xff]  ;;  %v22_v2 = vld [vmem:[%s285_s0 + $0x8] sm:$0x3]  ;;  %vm221_vm2 = vmpackc.low %vm33_vm0, %vm230_vm1  ;;  %v232_v4 = vmov 0.0   ;;  %v233_v5 = vmov 0   ;;  %vm29_vm4 = vcmask 80896  }
   0x2   :  { %v220_v3 = vpack.c.bf16 %v22_v2, %v21_v1  ;;  %211 = vmatprep.mubr.msk.f32.mxu0 %vm231_vm3, %v232_v4  ;;  %228 = vset.pattern.permute.xlu0 %v233_v5  ;;  %v23_v6 = vld [vmem:[%s286_s2] sm:$0x1f]  ;;  %vm119_vm5 = vcmask 1044480   ;;  %vm115_vm6 = vcmask 39936  }
   0x3   :  { %26 = vperm.xlu0 %228, %v23_v6   ;;  %214 = vmatprep.subr.mxu1 %v232_v4  ;;  %v20_v7 = vld [vmem:[%s287_s1] sm:$0x1f] }
   0x4   :  { %222 = vmatpush3.bf16.msk.msra.mxu0 %vm221_vm2, %v220_v3  ;;  %v109_v8 = vld [vmem:[%s288_s4] sm:$0x3]  ;;  %216 = vmatprep.mubr.msk.f32.mxu1 %vm231_vm3, %v232_v4 }
   0x5   :  { %v108_v14 = vld [vmem:[%s289_s3] sm:$0x3] }
   0x7   :  { %212 = vmatmul.mubr.msk.f32.vlgmr.msra.gmra.mrb[0].mxu0 %vm29_vm4, %v20_v7  ;;  %112 = vperm.xlu0 %228, %v109_v8  }
  0x82   :  { %v27_v9 = vpop.permute.xlu0 %26 }
  0x86   :  { %v113_v15 = vpop.permute.xlu0 %112 }
  0xda   :  { %v103_v10 = vpop.f32.mrb[0].mxu0 }
  0xdb   :  { %v104_v11 = vadd.f32 %v103_v10, %v27_v9  ;;  %v213_v12 = vpop.f32.mrb[1].mxu0 }
  0xdd   :  { %v107_v13 = vmax.f32 %v104_v11, 0.0 }
  0xdf   :  { %215 = vmatpush3.msk.msra.mxu1 %vm119_vm5, %v107_v13 }
  0xe0   :  { %217 = vmatmul.mubr.msk.f32.vlgmr.msra.gmra.mrb[0].mxu1 %vm115_vm6, %v108_v14 }
 0x1b3   :  { %v189_v16 = vpop.f32.mrb[0].mxu1 }
 0x1b4   :  { %v190_v17 = vadd.f32 %v189_v16, %v113_v15  ;;  %v218_v18 = vpop.f32.mrb[1].mxu1 }
 0x1b6   :  { %193 = vst [vmem:[%s290_s5] sm:$0x3] %v190_v17 }

</bundles_post_ra>
